<compile_context>
chip_gen: v5e
topology: v5e:2x2
jax: 0.10.0
libtpu: 0.0.40
codegen_flags: <defaults>
</compile_context>

<pallas_src>
import jax
import jax.numpy as jnp
from jax.experimental import pallas as pl
from jax.experimental.pallas import tpu as pltpu


def kron3_mlp_kernel(z_ref, t_ref, w1t_ref, b1_ref, w2t_ref, b2_ref, o_ref):
    # z_ref   : (N, D)         SMEM -- scalar coefficients z[p, a]
    # t_ref   : (D, W0, bn*N)  VMEM -- T[a, w, (n_local, m)], 'a' leading
    # w1t_ref : (WID, W0)      VMEM -- W1^T  (resident, constant index_map)
    # b1_ref  : (WID, 1)
    # w2t_ref : (OUT, WID)     VMEM -- W2^T
    # b2_ref  : (OUT, 1)
    # o_ref   : (OUT, N*bn*N)  lane-dense output block, columns in (p, n, m) order
    n_p, d = z_ref.shape
    _, w0, bn_n = t_ref.shape

    # Contiguous leading-dim loads of the D tiny T slices (no mid-dim slicing
    # of a loaded array -> no relayout copies).
    t_sl = [t_ref[a] for a in range(d)]                     # D x (W0, bn*N)

    # N^2 -> N^3 expansion in the (features-on-sublanes, rows-on-lanes) layout:
    #   F[w, (p, n, m)] = sum_a z[p, a] * T[a, w, (n, m)]
    # Each p-slab is D scalar*matrix VPU FMAs; slabs are concatenated along
    # lanes so F never round-trips through a padded VMEM scratch.
    slabs = []
    for p in range(n_p):
        acc = z_ref[p, 0] * t_sl[0]
        for a in range(1, d):
            acc = acc + z_ref[p, a] * t_sl[a]
        slabs.append(acc)
    f = jnp.concatenate(slabs, axis=-1)                     # (W0, L), L = N*bn*N

    # MLP head (depth=2): ReLU -> Linear -> ReLU -> Linear -> Sigmoid, all in
    # the (feature, L) layout so every intermediate and store is lane-dense.
    h = jnp.maximum(f, 0.0)
    h = jnp.dot(w1t_ref[...], h, preferred_element_type=jnp.float32) + b1_ref[...]
    h = jnp.maximum(h, 0.0)
    o = jnp.dot(w2t_ref[...], h, preferred_element_type=jnp.float32) + b2_ref[...]
    # Sigmoid: exp + approximate reciprocal both run on the EUP slot.
    o_ref[...] = pl.reciprocal(1.0 + jnp.exp(-o), approx=True)


def _pick_bn(n):
    """Block size (in 'n' points) per grid step.

    Single grid step by default: v5e/v6e have one TensorCore, so extra grid
    steps are pure ~0.35us/step pipeline overhead at this problem size.  Only
    on a 2-TensorCore v7x split into >=2 "parallel" steps, and only when the
    resulting T / output blocks stay 128-lane aligned.
    """
    try:
        kind = jax.devices()[0].device_kind.lower()
        two_cores = "v7" in kind
    except Exception:
        two_cores = False
    if two_cores:
        cands = [b for b in range(1, n) if n % b == 0
                 and (b * n) % 128 == 0 and n // b >= 2]
        if cands:
            return max(cands)
    return n


def kron3_mlp(x, first, w1, b1, w2, b2, *, y=None, z=None, bn=None):
    if y is None:
        y = x
    if z is None:
        z = x
    n, d = x.shape
    w0 = first.shape[0]
    wid = w1.shape[1]
    out_dim = w2.shape[1]
    n3 = n ** 3

    # Chained contraction computed ONCE in the wrapper (only N*N*D*W0 elements
    # of HBM traffic; the N^2 -> N^3 expansion happens inside the kernel):
    #   T[a, w, n, m] = sum_{d,b} x[n, d] * first[w, a, d, b] * y[m, b]
    # Layout: 'a' leading (contiguous per-slice kernel loads), feature w on
    # sublanes, merged (n, m) row index on lanes.
    t = jnp.einsum('nd,wadb,mb->awnm', x, first, y).reshape(d, w0, n * n)

    w1t = jnp.transpose(w1)                 # (WID, W0)
    w2t = jnp.transpose(w2)                 # (OUT, WID)
    b1c = b1.reshape(wid, 1)
    b2c = b2.reshape(out_dim, 1)

    if bn is None:
        bn = _pick_bn(n)
    assert n % bn == 0, "bn must divide N"
    nblk = n // bn
    grid = (nblk,)
    lblk = n * bn * n                       # output columns per grid step

    cost = pl.CostEstimate(
        flops=2 * n3 * (w0 * d + w0 * wid + wid * out_dim),
        transcendentals=2 * n3 * out_dim,   # exp + reciprocal
        bytes_accessed=4 * (t.size + z.size + w1t.size + w2t.size
                            + b1c.size + b2c.size + out_dim * n3),
    )

    out_t = pl.pallas_call(
        kron3_mlp_kernel,
        out_shape=jax.ShapeDtypeStruct((out_dim, n3), jnp.float32),
        grid_spec=pltpu.PrefetchScalarGridSpec(
            num_scalar_prefetch=0,
            grid=grid,
            in_specs=[
                pl.BlockSpec(memory_space=pltpu.MemorySpace.SMEM),        # z
                pl.BlockSpec((d, w0, bn * n), lambda i: (0, 0, i)),       # T blk
                pl.BlockSpec((wid, w0), lambda i: (0, 0)),                # W1^T
                pl.BlockSpec((wid, 1), lambda i: (0, 0)),                 # b1
                pl.BlockSpec((out_dim, wid), lambda i: (0, 0)),           # W2^T
                pl.BlockSpec((out_dim, 1), lambda i: (0, 0)),             # b2
            ],
            out_specs=pl.BlockSpec((out_dim, lblk), lambda i: (0, i)),
        ),
        compiler_params=pltpu.CompilerParams(
            dimension_semantics=("parallel",),
            vmem_limit_bytes=32 * 1024 * 1024,
        ),
        cost_estimate=cost,
    )(z, t, w1t, b1c, w2t, b2c)

    # Kernel emits columns in (block, p, n_local, m) order; restore the
    # reference row ordering r = n*N^2 + p*N + m (wrapper-side layout plumbing)
    # and transpose to the reference (N^3, OUT) layout.
    out_t = out_t.reshape(out_dim, nblk, n, bn, n)     # (o, i, p, n_local, m)
    out_t = out_t.transpose(0, 1, 3, 2, 4)             # (o, i, n_local, p, m)
    return out_t.reshape(out_dim, n3).T                # (N^3, OUT)


def ref_forward(x, first, w1, b1, w2, b2):
    """Pure-JAX transcription of the PyTorch forward (y = z = x)."""
    y = x
    z = x
    t = jnp.einsum('nd,wadb->wanb', x, first)        # x @ self.first
    t = jnp.einsum('wanb,mb->wanm', t, y)            # x @ y.transpose(0, 1)
    t = jnp.einsum('pa,wanm->wnpm', z, t)            # z @ x.transpose(1, 2)
    t = t.reshape(t.shape[0], -1).T                  # flatten(1,3).transpose(0,1)
    h = jnp.maximum(t, 0.0)                          # ReLU
    h = jnp.maximum(h @ w1 + b1, 0.0)                # Linear(width0->width), ReLU
    o = h @ w2 + b2                                  # Linear(width->output_dim)
    return jax.nn.sigmoid(o)                         # Sigmoid


if __name__ == "__main__":
    # Small config consistent with the module: input_dim=3, output_dim=3,
    # depth=2, width0=8, width=32, bias=True, use_sigmoid=True, N=8 points.
    D, W0, WID, OUT, N = 3, 8, 32, 3, 8

    key = jax.random.PRNGKey(0)
    kx, kf, kw1, kb1, kw2, kb2 = jax.random.split(key, 6)

    x = jax.random.normal(kx, (N, D), dtype=jnp.float32)

    bf = 1.0 / (W0 ** 0.5)
    first = jax.random.uniform(kf, (W0, D, D, D), dtype=jnp.float32,
                               minval=-bf, maxval=bf)
    b1w = 1.0 / (W0 ** 0.5)                          # fan_in = width0
    w1 = jax.random.uniform(kw1, (W0, WID), dtype=jnp.float32,
                            minval=-b1w, maxval=b1w)
    b1 = jax.random.uniform(kb1, (WID,), dtype=jnp.float32,
                            minval=-b1w, maxval=b1w)
    b2w = 1.0 / (WID ** 0.5)                         # fan_in = width
    w2 = jax.random.uniform(kw2, (WID, OUT), dtype=jnp.float32,
                            minval=-b2w, maxval=b2w)
    b2 = jax.random.uniform(kb2, (OUT,), dtype=jnp.float32,
                            minval=-b2w, maxval=b2w)

    out = kron3_mlp(x, first, w1, b1, w2, b2)
    out = jax.block_until_ready(out)

    ref = jax.block_until_ready(ref_forward(x, first, w1, b1, w2, b2))
    assert out.shape == (N ** 3, OUT), out.shape
    assert jnp.allclose(out, ref, rtol=2e-3, atol=2e-3), \
        float(jnp.max(jnp.abs(out - ref)))

    print("KERNEL_OK")
</pallas_src>

<mosaic_0001>
module attributes {stable_mosaic.version = 11 : i64} {
  func.func @kron3_mlp_kernel(%arg0: i32, %arg1: memref<8x3xf32, #tpu.memory_space<smem>>, %arg2: memref<3x8x64xf32, #tpu.memory_space<vmem>>, %arg3: memref<32x8xf32, #tpu.memory_space<vmem>>, %arg4: memref<32x1xf32, #tpu.memory_space<vmem>>, %arg5: memref<3x32xf32, #tpu.memory_space<vmem>>, %arg6: memref<3x1xf32, #tpu.memory_space<vmem>>, %arg7: memref<3x512xf32, #tpu.memory_space<vmem>>) attributes {dimension_semantics = [#tpu.dimension_semantics<parallel>], iteration_bounds = array<i64: 1>, scalar_prefetch = 0 : i64, scratch_operands = 0 : i64, tpu.core_type = #tpu.core_type<tc>, window_params = [{transform_indices = @transform_0, window_bounds = array<i64: 8, 3>}, {transform_indices = @transform_1, window_bounds = array<i64: 3, 8, 64>}, {pipeline_mode = #tpu.pipeline_mode<synchronous>, transform_indices = @transform_2, window_bounds = array<i64: 32, 8>}, {pipeline_mode = #tpu.pipeline_mode<synchronous>, transform_indices = @transform_3, window_bounds = array<i64: 32, 1>}, {pipeline_mode = #tpu.pipeline_mode<synchronous>, transform_indices = @transform_4, window_bounds = array<i64: 3, 32>}, {pipeline_mode = #tpu.pipeline_mode<synchronous>, transform_indices = @transform_5, window_bounds = array<i64: 3, 1>}, {transform_indices = @transform_6, window_bounds = array<i64: 3, 512>}]} {
    %c0 = arith.constant 0 : index
    %c0_0 = arith.constant 0 : index
    %c0_1 = arith.constant 0 : index
    %0 = vector.load %arg2[%c0, %c0_0, %c0_1] : memref<3x8x64xf32, #tpu.memory_space<vmem>>, vector<1x8x64xf32>
    %1 = vector.shape_cast %0 : vector<1x8x64xf32> to vector<8x64xf32>
    %c1 = arith.constant 1 : index
    %c0_2 = arith.constant 0 : index
    %c0_3 = arith.constant 0 : index
    %2 = vector.load %arg2[%c1, %c0_2, %c0_3] : memref<3x8x64xf32, #tpu.memory_space<vmem>>, vector<1x8x64xf32>
    %3 = vector.shape_cast %2 : vector<1x8x64xf32> to vector<8x64xf32>
    %c2 = arith.constant 2 : index
    %c0_4 = arith.constant 0 : index
    %c0_5 = arith.constant 0 : index
    %4 = vector.load %arg2[%c2, %c0_4, %c0_5] : memref<3x8x64xf32, #tpu.memory_space<vmem>>, vector<1x8x64xf32>
    %5 = vector.shape_cast %4 : vector<1x8x64xf32> to vector<8x64xf32>
    %c0_6 = arith.constant 0 : index
    %c0_7 = arith.constant 0 : index
    %6 = memref.load %arg1[%c0_6, %c0_7] : memref<8x3xf32, #tpu.memory_space<smem>>
    %7 = vector.broadcast %6 : f32 to vector<8x64xf32>
    %8 = arith.mulf %7, %1 : vector<8x64xf32>
    %c0_8 = arith.constant 0 : index
    %c1_9 = arith.constant 1 : index
    %9 = memref.load %arg1[%c0_8, %c1_9] : memref<8x3xf32, #tpu.memory_space<smem>>
    %10 = vector.broadcast %9 : f32 to vector<8x64xf32>
    %11 = arith.mulf %10, %3 : vector<8x64xf32>
    %12 = arith.addf %8, %11 : vector<8x64xf32>
    %c0_10 = arith.constant 0 : index
    %c2_11 = arith.constant 2 : index
    %13 = memref.load %arg1[%c0_10, %c2_11] : memref<8x3xf32, #tpu.memory_space<smem>>
    %14 = vector.broadcast %13 : f32 to vector<8x64xf32>
    %15 = arith.mulf %14, %5 : vector<8x64xf32>
    %16 = arith.addf %12, %15 : vector<8x64xf32>
    %c1_12 = arith.constant 1 : index
    %c0_13 = arith.constant 0 : index
    %17 = memref.load %arg1[%c1_12, %c0_13] : memref<8x3xf32, #tpu.memory_space<smem>>
    %18 = vector.broadcast %17 : f32 to vector<8x64xf32>
    %19 = arith.mulf %18, %1 : vector<8x64xf32>
    %c1_14 = arith.constant 1 : index
    %c1_15 = arith.constant 1 : index
    %20 = memref.load %arg1[%c1_14, %c1_15] : memref<8x3xf32, #tpu.memory_space<smem>>
    %21 = vector.broadcast %20 : f32 to vector<8x64xf32>
    %22 = arith.mulf %21, %3 : vector<8x64xf32>
    %23 = arith.addf %19, %22 : vector<8x64xf32>
    %c1_16 = arith.constant 1 : index
    %c2_17 = arith.constant 2 : index
    %24 = memref.load %arg1[%c1_16, %c2_17] : memref<8x3xf32, #tpu.memory_space<smem>>
    %25 = vector.broadcast %24 : f32 to vector<8x64xf32>
    %26 = arith.mulf %25, %5 : vector<8x64xf32>
    %27 = arith.addf %23, %26 : vector<8x64xf32>
    %c2_18 = arith.constant 2 : index
    %c0_19 = arith.constant 0 : index
    %28 = memref.load %arg1[%c2_18, %c0_19] : memref<8x3xf32, #tpu.memory_space<smem>>
    %29 = vector.broadcast %28 : f32 to vector<8x64xf32>
    %30 = arith.mulf %29, %1 : vector<8x64xf32>
    %c2_20 = arith.constant 2 : index
    %c1_21 = arith.constant 1 : index
    %31 = memref.load %arg1[%c2_20, %c1_21] : memref<8x3xf32, #tpu.memory_space<smem>>
    %32 = vector.broadcast %31 : f32 to vector<8x64xf32>
    %33 = arith.mulf %32, %3 : vector<8x64xf32>
    %34 = arith.addf %30, %33 : vector<8x64xf32>
    %c2_22 = arith.constant 2 : index
    %c2_23 = arith.constant 2 : index
    %35 = memref.load %arg1[%c2_22, %c2_23] : memref<8x3xf32, #tpu.memory_space<smem>>
    %36 = vector.broadcast %35 : f32 to vector<8x64xf32>
    %37 = arith.mulf %36, %5 : vector<8x64xf32>
    %38 = arith.addf %34, %37 : vector<8x64xf32>
    %c3 = arith.constant 3 : index
    %c0_24 = arith.constant 0 : index
    %39 = memref.load %arg1[%c3, %c0_24] : memref<8x3xf32, #tpu.memory_space<smem>>
    %40 = vector.broadcast %39 : f32 to vector<8x64xf32>
    %41 = arith.mulf %40, %1 : vector<8x64xf32>
    %c3_25 = arith.constant 3 : index
    %c1_26 = arith.constant 1 : index
    %42 = memref.load %arg1[%c3_25, %c1_26] : memref<8x3xf32, #tpu.memory_space<smem>>
    %43 = vector.broadcast %42 : f32 to vector<8x64xf32>
    %44 = arith.mulf %43, %3 : vector<8x64xf32>
    %45 = arith.addf %41, %44 : vector<8x64xf32>
    %c3_27 = arith.constant 3 : index
    %c2_28 = arith.constant 2 : index
    %46 = memref.load %arg1[%c3_27, %c2_28] : memref<8x3xf32, #tpu.memory_space<smem>>
    %47 = vector.broadcast %46 : f32 to vector<8x64xf32>
    %48 = arith.mulf %47, %5 : vector<8x64xf32>
    %49 = arith.addf %45, %48 : vector<8x64xf32>
    %c4 = arith.constant 4 : index
    %c0_29 = arith.constant 0 : index
    %50 = memref.load %arg1[%c4, %c0_29] : memref<8x3xf32, #tpu.memory_space<smem>>
    %51 = vector.broadcast %50 : f32 to vector<8x64xf32>
    %52 = arith.mulf %51, %1 : vector<8x64xf32>
    %c4_30 = arith.constant 4 : index
    %c1_31 = arith.constant 1 : index
    %53 = memref.load %arg1[%c4_30, %c1_31] : memref<8x3xf32, #tpu.memory_space<smem>>
    %54 = vector.broadcast %53 : f32 to vector<8x64xf32>
    %55 = arith.mulf %54, %3 : vector<8x64xf32>
    %56 = arith.addf %52, %55 : vector<8x64xf32>
    %c4_32 = arith.constant 4 : index
    %c2_33 = arith.constant 2 : index
    %57 = memref.load %arg1[%c4_32, %c2_33] : memref<8x3xf32, #tpu.memory_space<smem>>
    %58 = vector.broadcast %57 : f32 to vector<8x64xf32>
    %59 = arith.mulf %58, %5 : vector<8x64xf32>
    %60 = arith.addf %56, %59 : vector<8x64xf32>
    %c5 = arith.constant 5 : index
    %c0_34 = arith.constant 0 : index
    %61 = memref.load %arg1[%c5, %c0_34] : memref<8x3xf32, #tpu.memory_space<smem>>
    %62 = vector.broadcast %61 : f32 to vector<8x64xf32>
    %63 = arith.mulf %62, %1 : vector<8x64xf32>
    %c5_35 = arith.constant 5 : index
    %c1_36 = arith.constant 1 : index
    %64 = memref.load %arg1[%c5_35, %c1_36] : memref<8x3xf32, #tpu.memory_space<smem>>
    %65 = vector.broadcast %64 : f32 to vector<8x64xf32>
    %66 = arith.mulf %65, %3 : vector<8x64xf32>
    %67 = arith.addf %63, %66 : vector<8x64xf32>
    %c5_37 = arith.constant 5 : index
    %c2_38 = arith.constant 2 : index
    %68 = memref.load %arg1[%c5_37, %c2_38] : memref<8x3xf32, #tpu.memory_space<smem>>
    %69 = vector.broadcast %68 : f32 to vector<8x64xf32>
    %70 = arith.mulf %69, %5 : vector<8x64xf32>
    %71 = arith.addf %67, %70 : vector<8x64xf32>
    %c6 = arith.constant 6 : index
    %c0_39 = arith.constant 0 : index
    %72 = memref.load %arg1[%c6, %c0_39] : memref<8x3xf32, #tpu.memory_space<smem>>
    %73 = vector.broadcast %72 : f32 to vector<8x64xf32>
    %74 = arith.mulf %73, %1 : vector<8x64xf32>
    %c6_40 = arith.constant 6 : index
    %c1_41 = arith.constant 1 : index
    %75 = memref.load %arg1[%c6_40, %c1_41] : memref<8x3xf32, #tpu.memory_space<smem>>
    %76 = vector.broadcast %75 : f32 to vector<8x64xf32>
    %77 = arith.mulf %76, %3 : vector<8x64xf32>
    %78 = arith.addf %74, %77 : vector<8x64xf32>
    %c6_42 = arith.constant 6 : index
    %c2_43 = arith.constant 2 : index
    %79 = memref.load %arg1[%c6_42, %c2_43] : memref<8x3xf32, #tpu.memory_space<smem>>
    %80 = vector.broadcast %79 : f32 to vector<8x64xf32>
    %81 = arith.mulf %80, %5 : vector<8x64xf32>
    %82 = arith.addf %78, %81 : vector<8x64xf32>
    %c7 = arith.constant 7 : index
    %c0_44 = arith.constant 0 : index
    %83 = memref.load %arg1[%c7, %c0_44] : memref<8x3xf32, #tpu.memory_space<smem>>
    %84 = vector.broadcast %83 : f32 to vector<8x64xf32>
    %85 = arith.mulf %84, %1 : vector<8x64xf32>
    %c7_45 = arith.constant 7 : index
    %c1_46 = arith.constant 1 : index
    %86 = memref.load %arg1[%c7_45, %c1_46] : memref<8x3xf32, #tpu.memory_space<smem>>
    %87 = vector.broadcast %86 : f32 to vector<8x64xf32>
    %88 = arith.mulf %87, %3 : vector<8x64xf32>
    %89 = arith.addf %85, %88 : vector<8x64xf32>
    %c7_47 = arith.constant 7 : index
    %c2_48 = arith.constant 2 : index
    %90 = memref.load %arg1[%c7_47, %c2_48] : memref<8x3xf32, #tpu.memory_space<smem>>
    %91 = vector.broadcast %90 : f32 to vector<8x64xf32>
    %92 = arith.mulf %91, %5 : vector<8x64xf32>
    %93 = arith.addf %89, %92 : vector<8x64xf32>
    %94 = tpu.concatenate %16, %27, %38, %49, %60, %71, %82, %93 in 1 : vector<8x64xf32>, vector<8x64xf32>, vector<8x64xf32>, vector<8x64xf32>, vector<8x64xf32>, vector<8x64xf32>, vector<8x64xf32>, vector<8x64xf32> -> vector<8x512xf32>
    %cst = arith.constant 0.000000e+00 : f32
    %95 = vector.broadcast %cst : f32 to vector<8x512xf32>
    %96 = arith.maximumf %94, %95 : vector<8x512xf32>
    %c0_49 = arith.constant 0 : index
    %c0_50 = arith.constant 0 : index
    %97 = vector.load %arg3[%c0_49, %c0_50] : memref<32x8xf32, #tpu.memory_space<vmem>>, vector<32x8xf32>
    %cst_51 = arith.constant dense<0.000000e+00> : vector<32x512xf32>
    %98 = tpu.matmul %97, %96, %cst_51 {dimension_numbers = #tpu.dot_dimension_numbers<[1], [0], [0], [1], [0, 0, 1, 1], [], []>} : vector<32x8xf32>, vector<8x512xf32>, vector<32x512xf32> -> vector<32x512xf32>
    %c0_52 = arith.constant 0 : index
    %c0_53 = arith.constant 0 : index
    %99 = vector.load %arg4[%c0_52, %c0_53] : memref<32x1xf32, #tpu.memory_space<vmem>>, vector<32x1xf32>
    %100 = vector.broadcast %99 : vector<32x1xf32> to vector<32x512xf32>
    %101 = arith.addf %98, %100 : vector<32x512xf32>
    %cst_54 = arith.constant 0.000000e+00 : f32
    %102 = vector.broadcast %cst_54 : f32 to vector<32x512xf32>
    %103 = arith.maximumf %101, %102 : vector<32x512xf32>
    %c0_55 = arith.constant 0 : index
    %c0_56 = arith.constant 0 : index
    %104 = vector.load %arg5[%c0_55, %c0_56] : memref<3x32xf32, #tpu.memory_space<vmem>>, vector<3x32xf32>
    %cst_57 = arith.constant dense<0.000000e+00> : vector<3x512xf32>
    %105 = tpu.matmul %104, %103, %cst_57 {dimension_numbers = #tpu.dot_dimension_numbers<[1], [0], [0], [1], [0, 0, 1, 1], [], []>} : vector<3x32xf32>, vector<32x512xf32>, vector<3x512xf32> -> vector<3x512xf32>
    %c0_58 = arith.constant 0 : index
    %c0_59 = arith.constant 0 : index
    %106 = vector.load %arg6[%c0_58, %c0_59] : memref<3x1xf32, #tpu.memory_space<vmem>>, vector<3x1xf32>
    %107 = vector.broadcast %106 : vector<3x1xf32> to vector<3x512xf32>
    %108 = arith.addf %105, %107 : vector<3x512xf32>
    %cst_60 = arith.constant 0.000000e+00 : f32
    %109 = vector.broadcast %cst_60 : f32 to vector<3x512xf32>
    %110 = arith.subf %109, %108 : vector<3x512xf32>
    %111 = math.exp %110 : vector<3x512xf32>
    %cst_61 = arith.constant 1.000000e+00 : f32
    %112 = vector.broadcast %cst_61 : f32 to vector<3x512xf32>
    %113 = arith.addf %112, %111 : vector<3x512xf32>
    %114 = tpu.reciprocal %113 {approx = true} : vector<3x512xf32> -> vector<3x512xf32>
    %c0_62 = arith.constant 0 : index
    %c0_63 = arith.constant 0 : index
    %115 = vector.load %arg7[%c0_62, %c0_63] : memref<3x512xf32, #tpu.memory_space<vmem>>, vector<3x512xf32>
    tpu.vector_store %arg7[%c0_62, %c0_63], %114 {strides = array<i32>} : memref<3x512xf32, #tpu.memory_space<vmem>>, vector<3x512xf32>,
    return
  }
  func.func @transform_0(%arg0: i32) -> (i32, i32) {
    %c0_i32 = arith.constant 0 : i32
    %c0_i32_0 = arith.constant 0 : i32
    %c0_i32_1 = arith.constant 0 : i32
    return %c0_i32, %c0_i32_0 : i32, i32
  }
  func.func @transform_1(%arg0: i32) -> (i32, i32, i32) {
    %c0_i32 = arith.constant 0 : i32
    %c0_i32_0 = arith.constant 0 : i32
    %c0_i32_1 = arith.constant 0 : i32
    return %c0_i32, %c0_i32_0, %arg0 : i32, i32, i32
  }
  func.func @transform_2(%arg0: i32) -> (i32, i32) {
    %c0_i32 = arith.constant 0 : i32
    %c0_i32_0 = arith.constant 0 : i32
    %c0_i32_1 = arith.constant 0 : i32
    return %c0_i32, %c0_i32_0 : i32, i32
  }
  func.func @transform_3(%arg0: i32) -> (i32, i32) {
    %c0_i32 = arith.constant 0 : i32
    %c0_i32_0 = arith.constant 0 : i32
    %c0_i32_1 = arith.constant 0 : i32
    return %c0_i32, %c0_i32_0 : i32, i32
  }
  func.func @transform_4(%arg0: i32) -> (i32, i32) {
    %c0_i32 = arith.constant 0 : i32
    %c0_i32_0 = arith.constant 0 : i32
    %c0_i32_1 = arith.constant 0 : i32
    return %c0_i32, %c0_i32_0 : i32, i32
  }
  func.func @transform_5(%arg0: i32) -> (i32, i32) {
    %c0_i32 = arith.constant 0 : i32
    %c0_i32_0 = arith.constant 0 : i32
    %c0_i32_1 = arith.constant 0 : i32
    return %c0_i32, %c0_i32_0 : i32, i32
  }
  func.func @transform_6(%arg0: i32) -> (i32, i32) {
    %c0_i32 = arith.constant 0 : i32
    %c0_i32_0 = arith.constant 0 : i32
    return %c0_i32, %arg0 : i32, i32
  }
}

</mosaic_0001>

<bundles_post_ra>
// kernel: tpu_custom_call.1
= control target key start
LH: loop header
LB: loop body
LE: loop exit
PB: predicated region body
PF: predicated region fallthrough
CT: control target
= control target key end

     0   :  { %11 = vsyncpa [#allocation4], 0  ;;  %s724_s0 = inlined_call_operand.vmem [shape: f32[8,3], index: 0, kind: input, shape index: {}]   ;;  %s725_s1 = inlined_call_operand.vmem [shape: f32[3,8,64], index: 1, kind: input, shape index: {}]   ;;  %s726_s2 = inlined_call_operand.vmem [shape: f32[32,8], index: 2, kind: input, shape index: {}]   ;;  %s727_s3 = inlined_call_operand.vmem [shape: f32[32,1], index: 3, kind: input, shape index: {}]   ;;  %s728_s4 = inlined_call_operand.vmem [shape: f32[3,32], index: 4, kind: input, shape index: {}]   ;;  %s729_s5 = inlined_call_operand.vmem [shape: f32[3,1], index: 5, kind: input, shape index: {}]   ;;  %s730_s6 = inlined_call_operand.hbm [shape: f32[3,512], index: 6, kind: output, shape index: {}]  }
   0x1   :  { %12 = vsyncpa [#allocation3], 0  ;;  %s18_s23 = sshll.u32 %s724_s0, 4  ;;  %s587_s24 = smov [#allocation2]   ;;  %s19_s23 = int_to_ptr.vmem [resolvable:$true] %s18_s23 }
   0x2   :  { %21 = dma.vmem_to_smem %s19_s23, 128, %s587_s24, [#allocation4]  }
   0x3   :  { %583 = dma.done.wait [#allocation4], 128  }
   0x4   :  { %584 = vsyncadd [#allocation4], 4294967168 }
   0x5   :  { %36 = sfence }
   0x6   :  { %s485_s25 = sld [smem:[#allocation2 + $0x280]]  ;;  %v632_v0 = vld [vmem:[%s725_s1] sm:$0xff]  ;;  %v637_v1 = vld [vmem:[%s725_s1 + $0x8] sm:$0xff]  ;;  %v642_v2 = vld [vmem:[%s725_s1 + $0x10] sm:$0xff]  ;;  %s588_s17 = smov 64   ;;  %v589_v47 = vmov 0  }
   0x7   :  { %s486_s26 = sld [smem:[#allocation2 + $0x281]]  ;;  %528 = vset.pattern.permute.xlu1 %v589_v47  ;;  %529 = vset.pattern.permute.xlu2 %v589_v47  ;;  %vm146_vm0 = vcmask 523264   ;;  %vm183_vm1 = vcmask 64512   ;;  %vm335_vm2 = vcmask 261120   ;;  %vm445_vm3 = vcmask 1043456  }
   0x8   :  { %s487_s27 = sld [smem:[#allocation2 + $0x282]]  ;;  %530 = vset.pattern.permute.xlu0 %v589_v47 }
   0x9   :  { %s491_s28 = sld [smem:[#allocation2 + $0x380]] }
   0xa   :  { %s492_s7 = sld [smem:[#allocation2 + $0x381]] }
   0xb   :  { %s493_s0 = sld [smem:[#allocation2 + $0x382]] }
   0xc   :  { %v98_v3 = vstv %s485_s25  ;;  %s473_s12 = sld [smem:[#allocation2 + $0x80]] }
   0xd   :  { %v99_v4 = vmul.f32 %v98_v3, %v632_v0  ;;  %v101_v5 = vstv %s486_s26  ;;  %s474_s13 = sld [smem:[#allocation2 + $0x81]] }
   0xe   :  { %v102_v6 = vmul.f32 %v637_v1, %v101_v5  ;;  %v105_v7 = vstv %s487_s27  ;;  %s475_s14 = sld [smem:[#allocation2 + $0x82]] }
   0xf   :  { %v106_v8 = vmul.f32 %v642_v2, %v105_v7  ;;  %v120_v9 = vstv %s491_s28  ;;  %s479_s15 = sld [smem:[#allocation2 + $0x180]] }
  0x10   :  { %v103_v10 = vadd.f32 %v102_v6, %v99_v4  ;;  %v121_v11 = vmul.f32 %v120_v9, %v632_v0  ;;  %v123_v12 = vstv %s492_s7  ;;  %s480_s1 = sld [smem:[#allocation2 + $0x181]]  ;;  %v162_v4 = vld [vmem:[%s727_s3 + $0x18] sm:$0xff] }
  0x11   :  { %v124_v13 = vmul.f32 %v637_v1, %v123_v12  ;;  %v127_v14 = vstv %s493_s0  ;;  %s481_s16 = sld [smem:[#allocation2 + $0x182]]  ;;  %180 = vperm.xlu1 %528, %v162_v4  }
  0x12   :  { %v128_v15 = vmul.f32 %v642_v2, %v127_v14  ;;  %v54_v16 = vstv %s473_s12  ;;  %v107_v17 = vadd.f32 %v106_v8, %v103_v10  ;;  %s482_s18 = sld [smem:[#allocation2 + $0x200]] }
  0x13   :  { %v125_v18 = vadd.f32 %v124_v13, %v121_v11  ;;  %v55_v19 = vmul.f32 %v54_v16, %v632_v0  ;;  %v57_v20 = vstv %s474_s13  ;;  %s483_s19 = sld [smem:[#allocation2 + $0x201]]  ;;  %v155_v13 = vld [vmem:[%s726_s2] sm:$0xff]  ;;  %v161_v16 = vld [vmem:[%s727_s3 + $0x10] sm:$0xff] }
  0x14   :  { %v58_v21 = vmul.f32 %v637_v1, %v57_v20  ;;  %v61_v22 = vstv %s475_s14  ;;  %s488_s20 = sld [smem:[#allocation2 + $0x300]] }
  0x15   :  { %v129_v23 = vadd.f32 %v128_v15, %v125_v18  ;;  %v62_v24 = vmul.f32 %v642_v2, %v61_v22  ;;  %v76_v25 = vstv %s479_s15  ;;  %s489_s21 = sld [smem:[#allocation2 + $0x301]] }
  0x16   :  { %v59_v26 = vadd.f32 %v58_v21, %v55_v19  ;;  %v77_v27 = vmul.f32 %v76_v25, %v632_v0  ;;  %v79_v28 = vstv %s480_s1  ;;  %s484_s22 = sld [smem:[#allocation2 + $0x202]]  ;;  %v159_v25 = vld [vmem:[%s727_s3] sm:$0xff] }
  0x17   :  { %v518_v29 = vpack.i.bf16 %v107_v17, %v129_v23  ;;  %v80_v30 = vmul.f32 %v637_v1, %v79_v28  ;;  %v83_v31 = vstv %s481_s16  ;;  %s490_s23 = sld [smem:[#allocation2 + $0x302]] }
  0x18   :  { %v84_v32 = vmul.f32 %v642_v2, %v83_v31  ;;  %v63_v33 = vadd.f32 %v62_v24, %v59_v26  ;;  %s42_s24 = sld [smem:[#allocation2]]  ;;  %v87_v37 = vstv %s482_s18  ;;  %v156_v24 = vld [vmem:[%s726_s2 + $0x8] sm:$0xff]  ;;  %v157_v26 = vld [vmem:[%s726_s2 + $0x10] sm:$0xff] }
  0x19   :  { %519 = vrot.lane.b32.xlu0 %v518_v29, %s588_s17  ;;  %v81_v34 = vadd.f32 %v80_v30, %v77_v27  ;;  %s471_s25 = sld [smem:[#allocation2 + $0x1]]  ;;  %v90_v38 = vstv %s483_s19  ;;  %v88_v41 = vmul.f32 %v87_v37, %v632_v0  ;;  %175 = vperm.xlu1 %528, %v161_v16   ;;  %v158_v27 = vld [vmem:[%s726_s2 + $0x18] sm:$0xff] }
  0x1a   :  { %s476_s26 = sld [smem:[#allocation2 + $0x100]]  ;;  %v109_v39 = vstv %s488_s20  ;;  %v91_v42 = vmul.f32 %v637_v1, %v90_v38 }
  0x1b   :  { %v85_v35 = vadd.f32 %v84_v32, %v81_v34  ;;  %v112_v40 = vstv %s489_s21  ;;  %s477_s27 = sld [smem:[#allocation2 + $0x101]]  ;;  %v110_v44 = vmul.f32 %v109_v39, %v632_v0  ;;  %v329_v32 = vld [vmem:[%s729_s5] sm:$0x7] }
  0x1c   :  { %v94_v43 = vstv %s484_s22  ;;  %v113_v45 = vmul.f32 %v637_v1, %v112_v40  ;;  %s472_s28 = sld [smem:[#allocation2 + $0x2]]  ;;  %v92_v48 = vadd.f32 %v91_v42, %v88_v41 }
  0x1d   :  { %v523_v36 = vpack.i.bf16 %v63_v33, %v85_v35  ;;  %v116_v46 = vstv %s490_s23  ;;  %s660_s29 = sld [smem:[#allocation2 + $0x102]]  ;;  %v95_v49 = vmul.f32 %v642_v2, %v94_v43 }
  0x1e   :  { %v114_v50 = vadd.f32 %v113_v45, %v110_v44  ;;  %v117_v51 = vmul.f32 %v642_v2, %v116_v46  ;;  %v43_v52 = vstv %s42_s24  ;;  %s459_s24 = sshll.u32 %s730_s6, 4  ;;  %s460_s24 = int_to_ptr.hbm [resolvable:$true] %s459_s24 }
  0x1f   :  { %v46_v53 = vstv %s471_s25  ;;  %v96_v56 = vadd.f32 %v95_v49, %v92_v48  ;;  %v44_v57 = vmul.f32 %v43_v52, %v632_v0 }
  0x20   :  { %v65_v54 = vstv %s476_s26  ;;  %v47_v58 = vmul.f32 %v637_v1, %v46_v53  ;;  %v118_v59 = vadd.f32 %v117_v51, %v114_v50 }
  0x21   :  { %524 = vrot.lane.b32.xlu0 %v523_v36, %s588_s17  ;;  %v68_v55 = vstv %s477_s27  ;;  %v66_v61 = vmul.f32 %v65_v54, %v632_v0 }
  0x22   :  { %v50_v60 = vstv %s472_s28  ;;  %v69_v62 = vmul.f32 %v637_v1, %v68_v55  ;;  %v48_v7 = vadd.f32 %v47_v58, %v44_v57 }
  0x23   :  { %v72_v3 = vstv %s660_s29  ;;  %v51_v8 = vmul.f32 %v642_v2, %v50_v60 }
  0x24   :  { %v70_v0 = vadd.f32 %v69_v62, %v66_v61  ;;  %v73_v1 = vmul.f32 %v642_v2, %v72_v3  ;;  %v160_v2 = vld [vmem:[%s727_s3 + $0x8] sm:$0xff] }
  0x25   :  { %v52_v14 = vadd.f32 %v51_v8, %v48_v7  ;;  %170 = vperm.xlu2 %529, %v160_v2  }
  0x26   :  { %v74_v15 = vadd.f32 %v73_v1, %v70_v0 }
  0x29   :  { %332 = vperm.xlu0 %530, %v329_v32  }
  0x2d   :  { %165 = vperm.xlu2 %529, %v159_v25  }
  0x7f   :  { %v171_v38 = vpop.permute.xlu2 %170 }
  0x83   :  { %v181_v37 = vpop.permute.xlu1 %180 }
  0x87   :  { %v166_v52 = vpop.permute.xlu2 %165 }
  0x8b   :  { %v520_v63 = vpop.permute.xlu0 %519  ;;  %v176_v43 = vpop.permute.xlu1 %175 }
  0x8c   :  { %v522_v5 = vunpack.i.h.bf16 %v520_v63  ;;  %v521_v6 = vunpack.i.l.bf16 %v520_v63 }
  0x8e   :  { %v149_v9 = vsel %vm146_vm0, %v96_v56, %v522_v5  ;;  %v150_v10 = vsel %vm146_vm0, %v118_v59, %v521_v6 }
  0x8f   :  { %v153_v11 = vmax.f32 %v149_v9, 0.0  ;;  %v154_v12 = vmax.f32 %v150_v10, 0.0 }
  0x91   :  { %269 = vmatpush.msra.mxu2 %v153_v11  ;;  %298 = vmatpush.msra.mxu3 %v154_v12 }
  0x92   :  { %502 = vmatmul.msk.f32.vlgmr.msra.gmra.mxu2 %vm183_vm1, %v155_v13  ;;  %506 = vmatmul.msk.f32.vlgmr.msra.gmra.mxu3 %vm183_vm1, %v155_v13 }
  0x93   :  { %v525_v17 = vpop.permute.xlu0 %524 }
  0x94   :  { %v527_v18 = vunpack.i.h.bf16 %v525_v17  ;;  %v526_v19 = vunpack.i.l.bf16 %v525_v17  ;;  %v328_v17 = vld [vmem:[%s728_s4] sm:$0x7]  ;;  %s590_s4 = smov [#allocation5]  }
  0x95   :  { %s457_s21 = sshll.u32 %s590_s4, 4  ;;  %s458_s21 = int_to_ptr.vmem [resolvable:$true] %s457_s21 }
  0x96   :  { %v147_v20 = vsel %vm146_vm0, %v52_v14, %v527_v18  ;;  %v148_v21 = vsel %vm146_vm0, %v74_v15, %v526_v19 }
  0x97   :  { %v151_v22 = vmax.f32 %v147_v20, 0.0  ;;  %v152_v23 = vmax.f32 %v148_v21, 0.0 }
  0x99   :  { %211 = vmatpush.msra.mxu0 %v151_v22  ;;  %240 = vmatpush.msra.mxu1 %v152_v23 }
  0x9a   :  { %494 = vmatmul.msk.f32.vlgmr.msra.gmra.mxu0 %vm183_vm1, %v155_v13  ;;  %498 = vmatmul.msk.f32.vlgmr.msra.gmra.mxu1 %vm183_vm1, %v155_v13 }
  0x9b   :  { %503 = vmatmul.msk.f32.gmra.mxu2 %vm183_vm1, %v156_v24  ;;  %507 = vmatmul.msk.f32.gmra.mxu3 %vm183_vm1, %v156_v24  ;;  %v333_v18 = vpop.permute.xlu0 %332 }
  0xa2   :  { %495 = vmatmul.msk.f32.gmra.mxu0 %vm183_vm1, %v156_v24  ;;  %499 = vmatmul.msk.f32.gmra.mxu1 %vm183_vm1, %v156_v24 }
  0xa3   :  { %504 = vmatmul.msk.f32.gmra.mxu2 %vm183_vm1, %v157_v26  ;;  %508 = vmatmul.msk.f32.gmra.mxu3 %vm183_vm1, %v157_v26 }
  0xaa   :  { %496 = vmatmul.msk.f32.gmra.mxu0 %vm183_vm1, %v157_v26  ;;  %500 = vmatmul.msk.f32.gmra.mxu1 %vm183_vm1, %v157_v26 }
  0xab   :  { %505 = vmatmul.msk.f32.gmra.mxu2 %vm183_vm1, %v158_v27  ;;  %509 = vmatmul.msk.f32.gmra.mxu3 %vm183_vm1, %v158_v27 }
  0xb2   :  { %497 = vmatmul.msk.f32.gmra.mxu0 %vm183_vm1, %v158_v27  ;;  %501 = vmatmul.msk.f32.gmra.mxu1 %vm183_vm1, %v158_v27 }
 0x115   :  { %v271_v28 = vpop.f32.mrf.mxu2  ;;  %v300_v29 = vpop.f32.mrf.mxu3 }
 0x116   :  { %v272_v4 = vadd.f32 %v271_v28, %v166_v52  ;;  %v301_v5 = vadd.f32 %v300_v29, %v166_v52 }
 0x117   :  { %v213_v30 = vpop.f32.mrf.mxu0  ;;  %v242_v31 = vpop.f32.mrf.mxu1 }
 0x118   :  { %v214_v8 = vadd.f32 %v213_v30, %v166_v52  ;;  %v243_v9 = vadd.f32 %v242_v31, %v166_v52  ;;  %v314_v14 = vmax.f32 %v272_v4, 0.0  ;;  %v315_v15 = vmax.f32 %v301_v5, 0.0 }
 0x11a   :  { %v312_v16 = vmax.f32 %v214_v8, 0.0  ;;  %v313_v2 = vmax.f32 %v243_v9, 0.0 }
 0x11e   :  { %v274_v33 = vpop.f32.mrf.mxu2  ;;  %v303_v34 = vpop.f32.mrf.mxu3 }
 0x11f   :  { %v216_v35 = vpop.f32.mrf.mxu0  ;;  %v245_v36 = vpop.f32.mrf.mxu1  ;;  %v275_v57 = vadd.f32 %v274_v33, %v171_v38  ;;  %v304_v58 = vadd.f32 %v303_v34, %v171_v38 }
 0x120   :  { %v217_v61 = vadd.f32 %v216_v35, %v171_v38  ;;  %v246_v62 = vadd.f32 %v245_v36, %v171_v38 }
 0x121   :  { %v318_v1 = vmax.f32 %v275_v57, 0.0  ;;  %v319_v11 = vmax.f32 %v304_v58, 0.0 }
 0x122   :  { %v316_v12 = vmax.f32 %v217_v61, 0.0  ;;  %v317_v13 = vmax.f32 %v246_v62, 0.0 }
 0x126   :  { %v277_v39 = vpop.f32.mrf.mxu2  ;;  %v306_v40 = vpop.f32.mrf.mxu3 }
 0x127   :  { %v219_v41 = vpop.f32.mrf.mxu0  ;;  %v248_v42 = vpop.f32.mrf.mxu1  ;;  %v278_v46 = vadd.f32 %v277_v39, %v176_v43  ;;  %v307_v47 = vadd.f32 %v306_v40, %v176_v43 }
 0x128   :  { %v220_v53 = vadd.f32 %v219_v41, %v176_v43  ;;  %v249_v54 = vadd.f32 %v248_v42, %v176_v43 }
 0x129   :  { %v322_v6 = vmax.f32 %v278_v46, 0.0  ;;  %v323_v7 = vmax.f32 %v307_v47, 0.0 }
 0x12a   :  { %v320_v10 = vmax.f32 %v220_v53, 0.0  ;;  %v321_v0 = vmax.f32 %v249_v54, 0.0 }
 0x12e   :  { %v280_v44 = vpop.f32.mrf.mxu2  ;;  %v309_v45 = vpop.f32.mrf.mxu3 }
 0x12f   :  { %v281_v48 = vadd.f32 %v280_v44, %v181_v37  ;;  %v310_v49 = vadd.f32 %v309_v45, %v181_v37  ;;  %v222_v50 = vpop.f32.mrf.mxu0  ;;  %v251_v51 = vpop.f32.mrf.mxu1 }
 0x130   :  { %v223_v55 = vadd.f32 %v222_v50, %v181_v37  ;;  %v252_v56 = vadd.f32 %v251_v51, %v181_v37 }
 0x131   :  { %v326_v59 = vmax.f32 %v281_v48, 0.0  ;;  %v327_v60 = vmax.f32 %v310_v49, 0.0 }
 0x132   :  { %v324_v63 = vmax.f32 %v223_v55, 0.0  ;;  %v325_v3 = vmax.f32 %v252_v56, 0.0 }
 0x133   :  { %391 = vmatpush.msrb.mxu2 %v326_v59  ;;  %411 = vmatpush.msrb.mxu3 %v327_v60 }
 0x134   :  { %351 = vmatpush.msrb.mxu0 %v324_v63  ;;  %371 = vmatpush.msrb.mxu1 %v325_v3 }
 0x135   :  { %392 = vmatpush.msrb.mxu2 %v322_v6  ;;  %412 = vmatpush.msrb.mxu3 %v323_v7 }
 0x136   :  { %352 = vmatpush.msrb.mxu0 %v320_v10  ;;  %372 = vmatpush.msrb.mxu1 %v321_v0 }
 0x137   :  { %393 = vmatpush.msrb.mxu2 %v318_v1  ;;  %413 = vmatpush.msrb.mxu3 %v319_v11 }
 0x138   :  { %353 = vmatpush.msrb.mxu0 %v316_v12  ;;  %373 = vmatpush.msrb.mxu1 %v317_v13 }
 0x139   :  { %394 = vmatpush.msrb.mxu2 %v314_v14  ;;  %414 = vmatpush.msrb.mxu3 %v315_v15 }
 0x13a   :  { %354 = vmatpush.msrb.mxu0 %v312_v16  ;;  %374 = vmatpush.msrb.mxu1 %v313_v2 }
 0x13b   :  { %513 = vmatmul.msk.f32.vlgmr.msrb.gmra.mxu3 %vm335_vm2, %v328_v17  ;;  %512 = vmatmul.msk.f32.vlgmr.msrb.gmra.mxu2 %vm335_vm2, %v328_v17 }
 0x13c   :  { %511 = vmatmul.msk.f32.vlgmr.msrb.gmra.mxu1 %vm335_vm2, %v328_v17  ;;  %510 = vmatmul.msk.f32.vlgmr.msrb.gmra.mxu0 %vm335_vm2, %v328_v17 }
 0x1b9   :  { %v376_v19 = vpop.f32.mrf.mxu1  ;;  %v356_v20 = vpop.f32.mrf.mxu0 }
 0x1ba   :  { %v377_v21 = vadd.f32 %v376_v19, %v333_v18  ;;  %v357_v22 = vadd.f32 %v356_v20, %v333_v18 }
 0x1bc   :  { %v420_v23 = vsub.f32 0.0, %v377_v21  ;;  %v419_v24 = vsub.f32 0.0, %v357_v22 }
 0x1be   :  { %v416_v25 = vpop.f32.mrf.mxu3  ;;  %v425_v26 = vmul.f32 1.442695, %v420_v23  ;;  %v423_v27 = vmul.f32 1.442695, %v419_v24  ;;  %v396_v28 = vpop.f32.mrf.mxu2 }
 0x1bf   :  { %v417_v29 = vadd.f32 %v416_v25, %v333_v18  ;;  %v397_v30 = vadd.f32 %v396_v28, %v333_v18 }
 0x1c0   :  { %531 = vpow2.f32 %v425_v26 }
 0x1c1   :  { %v422_v31 = vsub.f32 0.0, %v417_v29  ;;  %533 = vpow2.f32 %v423_v27  ;;  %v421_v32 = vsub.f32 0.0, %v397_v30 }
 0x1c3   :  { %v429_v33 = vmul.f32 1.442695, %v422_v31  ;;  %v427_v34 = vmul.f32 1.442695, %v421_v32 }
 0x1c5   :  { %535 = vpow2.f32 %v429_v33 }
 0x1c6   :  { %v532_v35 = vpop.eup %531  ;;  %537 = vpow2.f32 %v427_v34 }
 0x1c7   :  { %v534_v36 = vpop.eup %533  ;;  %v432_v37 = vadd.f32 1.0, %v532_v35 }
 0x1c8   :  { %v431_v38 = vadd.f32 1.0, %v534_v36 }
 0x1c9   :  { %539 = vrcp.f32 %v432_v37 }
 0x1ca   :  { %541 = vrcp.f32 %v431_v38 }
 0x1cb   :  { %v536_v39 = vpop.eup %535 }
 0x1cc   :  { %v538_v40 = vpop.eup %537  ;;  %v434_v41 = vadd.f32 1.0, %v536_v39 }
 0x1cd   :  { %v433_v42 = vadd.f32 1.0, %v538_v40 }
 0x1ce   :  { %543 = vrcp.f32 %v434_v41 }
 0x1cf   :  { %v540_v43 = vpop.eup %539  ;;  %545 = vrcp.f32 %v433_v42 }
 0x1d0   :  { %v542_v44 = vpop.eup %541  ;;  %v443_v45 = vrot.slane %v540_v43, 4 }
 0x1d2   :  { %v446_v46 = vsel %vm445_vm3, %v542_v44, %v443_v45 }
 0x1d3   :  { %450 = vst [vmem:[#allocation5] sm:$0x77] %v446_v46 }
 0x1d4   :  { %v544_v47 = vpop.eup %543 }
 0x1d5   :  { %v444_v48 = vrot.slane %v544_v47, 4  ;;  %v546_v49 = vpop.eup %545 }
 0x1d7   :  { %v447_v50 = vsel %vm445_vm3, %v546_v49, %v444_v48 }
 0x1d8   :  { %451 = vst [vmem:[#allocation5 + $0x8] sm:$0x77] %v447_v50 }
 0x1d9   :  { %462 = dma.vmem_to_hbm [thread:$0]  %s458_s21, 256, %s460_s24, [#allocation3]  }
 0x1da   :  { %585 = dma.done.wait [#allocation3], 256  }
 0x1db   :  { %586 = vsyncadd [#allocation3], 4294967040 }
 0x1dc   :  { %467 = vsyncpa [#allocation3], 1 }
 0x1dd   :  { %468 = vsyncpa [#allocation4], 1 }

</bundles_post_ra>
